<compile_context>
chip_gen: v6e
topology: v6e:2x2x1
jax: 0.10.0
libtpu: 0.0.40
codegen_flags: <defaults>
</compile_context>

<pallas_src>
import functools

import jax
import jax.numpy as jnp
from jax.experimental import pallas as pl
from jax.experimental.pallas import tpu as pltpu


def _classifier_kernel(x_ref, w1_ref, b1_ref, w2_ref, b2_ref, o_ref):
    # Fully fused in VMEM: matmul (MXU) -> bias+ReLU (VPU) -> matmul -> bias.
    x = x_ref[...]                                        # (TB, D)
    h = jnp.dot(x, w1_ref[...],
                preferred_element_type=jnp.float32)       # (TB, D) on MXU
    h = jnp.maximum(h + b1_ref[...], 0.0)                 # bias bcast + ReLU
    o = jnp.dot(h, w2_ref[...],
                preferred_element_type=jnp.float32)       # (TB, C) on MXU
    o_ref[...] = (o + b2_ref[...]).astype(o_ref.dtype)


def _round_up(x, m):
    return ((x + m - 1) // m) * m


def _tile_plan(B, max_tile, min_tiles):
    """Pick (n_tiles, tb) with tb a multiple of 8 and <= ~max_tile rows."""
    n = max(pl.cdiv(B, max_tile), min_tiles)   # enough tiles for big B / TCs
    n = max(min(n, pl.cdiv(B, 8)), 1)          # never more tiles than 8-row groups
    tb = _round_up(pl.cdiv(B, n), 8)
    return n, tb


def _vmem_budget_bytes(tb, D, C, bytes_per_el=4):
    lane = 128
    dl, cl = _round_up(D, lane), _round_up(C, lane)       # internal lane padding
    acts = 2 * tb * (dl + cl) * bytes_per_el              # x & out tiles, dbl-buffered
    params = (_round_up(D, 8) * (dl + cl)                 # W1, W2 (resident, single buf)
              + 8 * (dl + cl)) * bytes_per_el             # b1, b2
    need = acts + params
    # 2x headroom, floor 1 MiB, cap 32 MiB (v7x-safe: 64 MiB physical VMEM).
    return int(min(max(2 * need, 1 << 20), 32 << 20))


@functools.partial(jax.jit, static_argnames=("max_tile", "min_tiles"))
def classifier_forward(x, w1, b1, w2, b2, *, max_tile=512, min_tiles=2):
    """x: (B, D) f32; w1: (D, D); b1: (1, D) or (D,); w2: (D, C); b2: (1, C) or (C,).

    Weights are stored (in_features, out_features) == PyTorch W.T.
    Returns (B, C) logits.
    """
    B, D = x.shape
    C = w2.shape[1]
    b1 = b1.reshape(1, D)
    b2 = b2.reshape(1, C)

    n_tiles, tb = _tile_plan(B, max_tile, min_tiles)
    B_pad = n_tiles * tb

    # Only the batch dim of x is (slightly) padded; feature/class dims are used
    # at their true widths.  Padded rows produce relu(b1)@W2 + b2 garbage and
    # are dropped by the final [:B] slice.
    xp = jnp.pad(x, ((0, B_pad - B), (0, 0))) if B_pad != B else x

    out = pl.pallas_call(
        _classifier_kernel,
        out_shape=jax.ShapeDtypeStruct((B_pad, C), x.dtype),
        grid=(n_tiles,),
        in_specs=[
            pl.BlockSpec((tb, D), lambda i: (i, 0)),   # x: batch-tiled, pipelined
            pl.BlockSpec((D, D), lambda i: (0, 0)),    # W1: VMEM-resident
            pl.BlockSpec((1, D), lambda i: (0, 0)),    # b1: VMEM-resident
            pl.BlockSpec((D, C), lambda i: (0, 0)),    # W2: VMEM-resident
            pl.BlockSpec((1, C), lambda i: (0, 0)),    # b2: VMEM-resident
        ],
        out_specs=pl.BlockSpec((tb, C), lambda i: (i, 0)),
        compiler_params=pltpu.CompilerParams(
            dimension_semantics=("parallel",),         # shards tiles across v7x TCs
            vmem_limit_bytes=_vmem_budget_bytes(tb, D, C),
        ),
    )(xp, w1, b1, w2, b2)

    return out if B_pad == B else out[:B]


def _ref_forward(x, w1, b1, w2, b2):
    h = jnp.maximum(x @ w1 + b1.reshape(1, -1), 0.0)
    return h @ w2 + b2.reshape(1, -1)


if __name__ == "__main__":
    key = jax.random.PRNGKey(0)

    # Module config: input_dim=16, bi_lstm=True -> effective input_dim=32,
    # classes=5.  Batch of 300 row representations (not a multiple of 8, so
    # the small batch-padding path is exercised; grid = (2,), tb = 152).
    base_input_dim = 16
    bi_lstm = True
    input_dim = base_input_dim * 2 if bi_lstm else base_input_dim  # 32
    classes = 5
    batch = 300

    kx, k1w, k1b, k2w, k2b = jax.random.split(key, 5)

    # Deterministic param init (PyTorch nn.Linear default: U(-1/sqrt(fan_in), +)),
    # stored pre-transposed as (in_features, out_features).  Parameters are
    # created once at their true (unpadded) shapes and consumed directly.
    bound1 = 1.0 / jnp.sqrt(jnp.float32(input_dim))
    bound2 = 1.0 / jnp.sqrt(jnp.float32(input_dim))
    w1 = jax.random.uniform(k1w, (input_dim, input_dim), jnp.float32,
                            -bound1, bound1)
    b1 = jax.random.uniform(k1b, (1, input_dim), jnp.float32, -bound1, bound1)
    w2 = jax.random.uniform(k2w, (input_dim, classes), jnp.float32,
                            -bound2, bound2)
    b2 = jax.random.uniform(k2b, (1, classes), jnp.float32, -bound2, bound2)

    x = jax.random.normal(kx, (batch, input_dim), jnp.float32)

    out = classifier_forward(x, w1, b1, w2, b2)
    out = jax.block_until_ready(out)

    ref = _ref_forward(x, w1, b1, w2, b2)
    assert out.shape == (batch, classes)
    assert jnp.allclose(out, ref, atol=1e-5, rtol=1e-5)

    print("KERNEL_OK")
</pallas_src>

<mosaic_0001>
module attributes {stable_mosaic.version = 11 : i64} {
  func.func @_classifier_kernel(%arg0: i32, %arg1: memref<152x32xf32, #tpu.memory_space<vmem>>, %arg2: memref<32x32xf32, #tpu.memory_space<vmem>>, %arg3: memref<1x32xf32, #tpu.memory_space<vmem>>, %arg4: memref<32x5xf32, #tpu.memory_space<vmem>>, %arg5: memref<1x5xf32, #tpu.memory_space<vmem>>, %arg6: memref<152x5xf32, #tpu.memory_space<vmem>>) attributes {dimension_semantics = [#tpu.dimension_semantics<parallel>], iteration_bounds = array<i64: 2>, scalar_prefetch = 0 : i64, scratch_operands = 0 : i64, tpu.core_type = #tpu.core_type<tc>, window_params = [{transform_indices = @transform_0, window_bounds = array<i64: 152, 32>}, {pipeline_mode = #tpu.pipeline_mode<synchronous>, transform_indices = @transform_1, window_bounds = array<i64: 32, 32>}, {pipeline_mode = #tpu.pipeline_mode<synchronous>, transform_indices = @transform_2, window_bounds = array<i64: 1, 32>}, {pipeline_mode = #tpu.pipeline_mode<synchronous>, transform_indices = @transform_3, window_bounds = array<i64: 32, 5>}, {pipeline_mode = #tpu.pipeline_mode<synchronous>, transform_indices = @transform_4, window_bounds = array<i64: 1, 5>}, {transform_indices = @transform_5, window_bounds = array<i64: 152, 5>}]} {
    %c0 = arith.constant 0 : index
    %c0_0 = arith.constant 0 : index
    %0 = vector.load %arg1[%c0, %c0_0] : memref<152x32xf32, #tpu.memory_space<vmem>>, vector<152x32xf32>
    %c0_1 = arith.constant 0 : index
    %c0_2 = arith.constant 0 : index
    %1 = vector.load %arg2[%c0_1, %c0_2] : memref<32x32xf32, #tpu.memory_space<vmem>>, vector<32x32xf32>
    %cst = arith.constant dense<0.000000e+00> : vector<152x32xf32>
    %2 = tpu.matmul %0, %1, %cst {dimension_numbers = #tpu.dot_dimension_numbers<[1], [0], [0], [1], [0, 0, 1, 1], [], []>} : vector<152x32xf32>, vector<32x32xf32>, vector<152x32xf32> -> vector<152x32xf32>
    %c0_3 = arith.constant 0 : index
    %c0_4 = arith.constant 0 : index
    %3 = vector.load %arg3[%c0_3, %c0_4] : memref<1x32xf32, #tpu.memory_space<vmem>>, vector<1x32xf32>
    %4 = vector.broadcast %3 : vector<1x32xf32> to vector<152x32xf32>
    %5 = arith.addf %2, %4 : vector<152x32xf32>
    %cst_5 = arith.constant 0.000000e+00 : f32
    %6 = vector.broadcast %cst_5 : f32 to vector<152x32xf32>
    %7 = arith.maximumf %5, %6 : vector<152x32xf32>
    %c0_6 = arith.constant 0 : index
    %c0_7 = arith.constant 0 : index
    %8 = vector.load %arg4[%c0_6, %c0_7] : memref<32x5xf32, #tpu.memory_space<vmem>>, vector<32x5xf32>
    %cst_8 = arith.constant dense<0.000000e+00> : vector<152x5xf32>
    %9 = tpu.matmul %7, %8, %cst_8 {dimension_numbers = #tpu.dot_dimension_numbers<[1], [0], [0], [1], [0, 0, 1, 1], [], []>} : vector<152x32xf32>, vector<32x5xf32>, vector<152x5xf32> -> vector<152x5xf32>
    %c0_9 = arith.constant 0 : index
    %c0_10 = arith.constant 0 : index
    %10 = vector.load %arg5[%c0_9, %c0_10] : memref<1x5xf32, #tpu.memory_space<vmem>>, vector<1x5xf32>
    %11 = vector.broadcast %10 : vector<1x5xf32> to vector<152x5xf32>
    %12 = arith.addf %9, %11 : vector<152x5xf32>
    %c0_11 = arith.constant 0 : index
    %c0_12 = arith.constant 0 : index
    %13 = vector.load %arg6[%c0_11, %c0_12] : memref<152x5xf32, #tpu.memory_space<vmem>>, vector<152x5xf32>
    tpu.vector_store %arg6[%c0_11, %c0_12], %12 {strides = array<i32>} : memref<152x5xf32, #tpu.memory_space<vmem>>, vector<152x5xf32>,
    return
  }
  func.func @transform_0(%arg0: i32) -> (i32, i32) {
    %c0_i32 = arith.constant 0 : i32
    %c0_i32_0 = arith.constant 0 : i32
    return %arg0, %c0_i32 : i32, i32
  }
  func.func @transform_1(%arg0: i32) -> (i32, i32) {
    %c0_i32 = arith.constant 0 : i32
    %c0_i32_0 = arith.constant 0 : i32
    %c0_i32_1 = arith.constant 0 : i32
    return %c0_i32, %c0_i32_0 : i32, i32
  }
  func.func @transform_2(%arg0: i32) -> (i32, i32) {
    %c0_i32 = arith.constant 0 : i32
    %c0_i32_0 = arith.constant 0 : i32
    %c0_i32_1 = arith.constant 0 : i32
    return %c0_i32, %c0_i32_0 : i32, i32
  }
  func.func @transform_3(%arg0: i32) -> (i32, i32) {
    %c0_i32 = arith.constant 0 : i32
    %c0_i32_0 = arith.constant 0 : i32
    %c0_i32_1 = arith.constant 0 : i32
    return %c0_i32, %c0_i32_0 : i32, i32
  }
  func.func @transform_4(%arg0: i32) -> (i32, i32) {
    %c0_i32 = arith.constant 0 : i32
    %c0_i32_0 = arith.constant 0 : i32
    %c0_i32_1 = arith.constant 0 : i32
    return %c0_i32, %c0_i32_0 : i32, i32
  }
  func.func @transform_5(%arg0: i32) -> (i32, i32) {
    %c0_i32 = arith.constant 0 : i32
    %c0_i32_0 = arith.constant 0 : i32
    return %arg0, %c0_i32 : i32, i32
  }
}

</mosaic_0001>

<bundles_post_ra>
// kernel: classifier_forward.1
= control target key start
LH: loop header
LB: loop body
LE: loop exit
PB: predicated region body
PF: predicated region fallthrough
CT: control target
= control target key end

     0   :  { %s1074_s18 = smov 0   ;;  %s1353_s0 = inlined_call_operand.vmem [shape: f32[304,32], index: 0, kind: input, shape index: {}]   ;;  %s1354_s1 = inlined_call_operand.vmem [shape: f32[32,32], index: 1, kind: input, shape index: {}]   ;;  %s1355_s2 = inlined_call_operand.vmem [shape: f32[1,32], index: 2, kind: input, shape index: {}]   ;;  %s1356_s3 = inlined_call_operand.vmem [shape: f32[32,5], index: 3, kind: input, shape index: {}]   ;;  %s1357_s4 = inlined_call_operand.vmem [shape: f32[1,5], index: 4, kind: input, shape index: {}]   ;;  %s1358_s5 = inlined_call_operand.vmem [shape: f32[304,5], index: 5, kind: output, shape index: {}]  }
   0x1 LB: > { %s799_s19 = sadd.s32 4294967295, %s1040_s18   ;;  %p803_p0 = scmp.ge.s32.totalorder %s1040_s18, 1  ;;  %s1040_s18 = sphi %s1074_s18, %s15_s18  }
   0x2   : > { %p188_p1 = scmp.lt.s32.totalorder %s1040_s18, 3 }
   0x4   : > { %p189_p2 = pnand %p803_p0, %p188_p1 }
   0x5   : > { %s216_s22 = smul.u32 (!%p189_p2), 19, %s799_s19 }
   0x6   : > { %192 = sbr.rel (%p189_p2) target bundleno = 485 (0x1e5), region = 40 }
   0x7   : > { %p217_p3 = scmp.lt.s32.totalorder (!%p189_p2), %s216_s22, 37 }
   0xb   : > { %v250_v0 = vld [vmem:[%s1354_s1 + $0x18] sm:$0xff]  ;;  %v1042_v1 = vmov 0.0   ;;  %v249_v2 = vld [vmem:[%s1354_s1 + $0x10] sm:$0xff]  ;;  %vm1043_vm0 = vmmov 0   ;;  %v248_v4 = vld [vmem:[%s1354_s1 + $0x8] sm:$0xff]  ;;  %s1360_s22 = smov (!%p217_p3, %s216_s22), 37 }
   0xc   : > { %894 = vmatprep.subr.mxu0 %v1042_v1  ;;  %902 = vmatprep.mubr.msk.f32.mxu0 %vm1043_vm0, %v1042_v1  ;;  %v498_v3 = vld [vmem:[%s1356_s3 + $0x18] sm:$0xff]  ;;  %v247_v5 = vld [vmem:[%s1354_s1] sm:$0xff]  ;;  %s804_s6 = sshll.u32 %s1360_s22, 3  ;;  %vm258_vm1 = vcmask 261120   ;;  %v497_v23 = vld [vmem:[%s1356_s3 + $0x10] sm:$0xff]  ;;  %vm723_vm2 = vcmask 39936  }
   0xd   : > { %895 = vmatpush3.msra.mxu0 %v250_v0  ;;  %959 = vmatprep.subr.mxu1 %v1042_v1  ;;  %s1115_s9 = scalar_lea.vmem %s1353_s0, %s804_s6  ;;  %v496_v25 = vld [vmem:[%s1356_s3 + $0x8] sm:$0xff]  ;;  %v495_v26 = vld [vmem:[%s1356_s3] sm:$0xff]  ;;  %s1291_s24 = scalar_lea.vmem %s1358_s5, %s804_s6 }
   0xe   : > { %896 = vmatprep.subr.mxu0 %v1042_v1  ;;  %960 = vmatpush3.msra.mxu1 %v498_v3  ;;  %v228_v6 = vld [vmem:[%s1115_s9] sm:$0xff]  ;;  %v229_v7 = vld [vmem:[%s1115_s9 + $0x8] sm:$0xff]  ;;  %v230_v8 = vld [vmem:[%s1115_s9 + $0x10] sm:$0xff] }
   0xf   : > { %897 = vmatpush3.msra.mxu0 %v249_v2  ;;  %961 = vmatprep.subr.mxu1 %v1042_v1  ;;  %v231_v9 = vld [vmem:[%s1115_s9 + $0x18] sm:$0xff]  ;;  %v232_v10 = vld [vmem:[%s1115_s9 + $0x20] sm:$0xff]  ;;  %v233_v11 = vld [vmem:[%s1115_s9 + $0x28] sm:$0xff] }
  0x10   : > { %898 = vmatprep.subr.mxu0 %v1042_v1  ;;  %967 = vmatprep.mubr.msk.f32.mxu1 %vm1043_vm0, %v1042_v1  ;;  %v234_v12 = vld [vmem:[%s1115_s9 + $0x30] sm:$0xff]  ;;  %v235_v13 = vld [vmem:[%s1115_s9 + $0x38] sm:$0xff]  ;;  %v236_v14 = vld [vmem:[%s1115_s9 + $0x40] sm:$0xff] }
  0x11   : > { %899 = vmatpush3.msra.mxu0 %v248_v4  ;;  %v237_v15 = vld [vmem:[%s1115_s9 + $0x48] sm:$0xff]  ;;  %v238_v16 = vld [vmem:[%s1115_s9 + $0x50] sm:$0xff]  ;;  %v239_v17 = vld [vmem:[%s1115_s9 + $0x58] sm:$0xff]  ;;  %962 = vmatpush3.msra.mxu1 %v497_v23 }
  0x12   : > { %900 = vmatprep.subr.mxu0 %v1042_v1  ;;  %v240_v18 = vld [vmem:[%s1115_s9 + $0x60] sm:$0xff]  ;;  %v241_v19 = vld [vmem:[%s1115_s9 + $0x68] sm:$0xff]  ;;  %v242_v20 = vld [vmem:[%s1115_s9 + $0x70] sm:$0xff]  ;;  %963 = vmatprep.subr.mxu1 %v1042_v1 }
  0x13   : > { %901 = vmatpush3.msra.mxu0 %v247_v5  ;;  %v243_v21 = vld [vmem:[%s1115_s9 + $0x78] sm:$0xff]  ;;  %v244_v22 = vld [vmem:[%s1115_s9 + $0x80] sm:$0xff]  ;;  %v245_v24 = vld [vmem:[%s1115_s9 + $0x88] sm:$0xff]  ;;  %964 = vmatpush3.msra.mxu1 %v496_v25 }
  0x14   : > { %903 = vmatmul.mubr.msk.f32.vlgmr.msra.gmra.mxu0 %vm258_vm1, %v228_v6  ;;  %965 = vmatprep.subr.mxu1 %v1042_v1  ;;  %v246_v27 = vld [vmem:[%s1115_s9 + $0x90] sm:$0xff]  ;;  %v1205_v28 = vld [vmem:[%s1355_s2] ss:$0 sm:$0xff] }
  0x15   : > { %905 = vmatprep.mubr.msk.f32.mxu0 %vm1043_vm0, %v1042_v1  ;;  %966 = vmatpush3.msra.mxu1 %v495_v26 }
  0x18   : > { %906 = vmatmul.mubr.msk.f32.gmra.mxu0 %vm258_vm1, %v229_v7 }
  0x19   : > { %908 = vmatprep.mubr.msk.f32.mxu0 %vm1043_vm0, %v1042_v1 }
  0x1c   : > { %909 = vmatmul.mubr.msk.f32.gmra.mxu0 %vm258_vm1, %v230_v8 }
  0x1d   : > { %911 = vmatprep.mubr.msk.f32.mxu0 %vm1043_vm0, %v1042_v1 }
  0x20   : > { %912 = vmatmul.mubr.msk.f32.gmra.mxu0 %vm258_vm1, %v231_v9 }
  0x21   : > { %914 = vmatprep.mubr.msk.f32.mxu0 %vm1043_vm0, %v1042_v1 }
  0x24   : > { %915 = vmatmul.mubr.msk.f32.gmra.mxu0 %vm258_vm1, %v232_v10 }
  0x25   : > { %917 = vmatprep.mubr.msk.f32.mxu0 %vm1043_vm0, %v1042_v1 }
  0x28   : > { %918 = vmatmul.mubr.msk.f32.gmra.mxu0 %vm258_vm1, %v233_v11 }
  0x29   : > { %920 = vmatprep.mubr.msk.f32.mxu0 %vm1043_vm0, %v1042_v1 }
  0x2c   : > { %921 = vmatmul.mubr.msk.f32.gmra.mxu0 %vm258_vm1, %v234_v12 }
  0x2d   : > { %923 = vmatprep.mubr.msk.f32.mxu0 %vm1043_vm0, %v1042_v1 }
  0x30   : > { %924 = vmatmul.mubr.msk.f32.gmra.mxu0 %vm258_vm1, %v235_v13 }
  0x31   : > { %926 = vmatprep.mubr.msk.f32.mxu0 %vm1043_vm0, %v1042_v1 }
  0x34   : > { %927 = vmatmul.mubr.msk.f32.gmra.mxu0 %vm258_vm1, %v236_v14 }
  0x35   : > { %929 = vmatprep.mubr.msk.f32.mxu0 %vm1043_vm0, %v1042_v1 }
  0x38   : > { %930 = vmatmul.mubr.msk.f32.gmra.mxu0 %vm258_vm1, %v237_v15 }
  0x39   : > { %932 = vmatprep.mubr.msk.f32.mxu0 %vm1043_vm0, %v1042_v1 }
  0x3c   : > { %933 = vmatmul.mubr.msk.f32.gmra.mxu0 %vm258_vm1, %v238_v16 }
  0x3d   : > { %935 = vmatprep.mubr.msk.f32.mxu0 %vm1043_vm0, %v1042_v1 }
  0x40   : > { %936 = vmatmul.mubr.msk.f32.gmra.mxu0 %vm258_vm1, %v239_v17 }
  0x41   : > { %938 = vmatprep.mubr.msk.f32.mxu0 %vm1043_vm0, %v1042_v1 }
  0x44   : > { %939 = vmatmul.mubr.msk.f32.gmra.mxu0 %vm258_vm1, %v240_v18 }
  0x45   : > { %941 = vmatprep.mubr.msk.f32.mxu0 %vm1043_vm0, %v1042_v1 }
  0x48   : > { %942 = vmatmul.mubr.msk.f32.gmra.mxu0 %vm258_vm1, %v241_v19 }
  0x49   : > { %944 = vmatprep.mubr.msk.f32.mxu0 %vm1043_vm0, %v1042_v1 }
  0x4c   : > { %945 = vmatmul.mubr.msk.f32.gmra.mxu0 %vm258_vm1, %v242_v20 }
  0x4d   : > { %947 = vmatprep.mubr.msk.f32.mxu0 %vm1043_vm0, %v1042_v1 }
  0x50   : > { %948 = vmatmul.mubr.msk.f32.gmra.mxu0 %vm258_vm1, %v243_v21 }
  0x51   : > { %950 = vmatprep.mubr.msk.f32.mxu0 %vm1043_vm0, %v1042_v1 }
  0x54   : > { %951 = vmatmul.mubr.msk.f32.gmra.mxu0 %vm258_vm1, %v244_v22 }
  0x55   : > { %953 = vmatprep.mubr.msk.f32.mxu0 %vm1043_vm0, %v1042_v1 }
  0x58   : > { %954 = vmatmul.mubr.msk.f32.gmra.mxu0 %vm258_vm1, %v245_v24 }
  0x59   : > { %956 = vmatprep.mubr.msk.f32.mxu0 %vm1043_vm0, %v1042_v1 }
  0x5c   : > { %957 = vmatmul.mubr.msk.f32.gmra.mxu0 %vm258_vm1, %v246_v27 }
  0xd4   : > { %v382_v29 = vpop.f32.mrf.mxu0 }
  0xd5   : > { %v383_v30 = vadd.f32 %v1205_v28, %v382_v29 }
  0xd6   : > { %v904_v31 = vpop.f32.mrf.mxu0 }
  0xd7   : > { %v476_v32 = vmax.f32 %v383_v30, 0.0 }
  0xd8   : > { %v387_v33 = vpop.f32.mrf.mxu0 }
  0xd9   : > { %v388_v34 = vadd.f32 %v1205_v28, %v387_v33  ;;  %968 = vmatmul.mubr.msk.f32.vlgmr.msra.gmra.mxu1 %vm258_vm1, %v476_v32 }
  0xda   : > { %v907_v35 = vpop.f32.mrf.mxu0  ;;  %970 = vmatprep.mubr.msk.f32.mxu1 %vm1043_vm0, %v1042_v1 }
  0xdb   : > { %v477_v36 = vmax.f32 %v388_v34, 0.0 }
  0xdc   : > { %v392_v37 = vpop.f32.mrf.mxu0 }
  0xdd   : > { %v393_v38 = vadd.f32 %v1205_v28, %v392_v37  ;;  %971 = vmatmul.mubr.msk.f32.gmra.mxu1 %vm258_vm1, %v477_v36 }
  0xde   : > { %v910_v39 = vpop.f32.mrf.mxu0  ;;  %973 = vmatprep.mubr.msk.f32.mxu1 %vm1043_vm0, %v1042_v1 }
  0xdf   : > { %v478_v40 = vmax.f32 %v393_v38, 0.0 }
  0xe0   : > { %v397_v41 = vpop.f32.mrf.mxu0 }
  0xe1   : > { %v398_v42 = vadd.f32 %v1205_v28, %v397_v41  ;;  %974 = vmatmul.mubr.msk.f32.gmra.mxu1 %vm258_vm1, %v478_v40 }
  0xe2   : > { %v913_v43 = vpop.f32.mrf.mxu0  ;;  %976 = vmatprep.mubr.msk.f32.mxu1 %vm1043_vm0, %v1042_v1 }
  0xe3   : > { %v479_v44 = vmax.f32 %v398_v42, 0.0  ;;  %v1284_v43 = vld [vmem:[%s1357_s4] ss:$0 sm:$0xff] }
  0xe4   : > { %v402_v45 = vpop.f32.mrf.mxu0 }
  0xe5   : > { %v403_v46 = vadd.f32 %v1205_v28, %v402_v45  ;;  %977 = vmatmul.mubr.msk.f32.gmra.mxu1 %vm258_vm1, %v479_v44 }
  0xe6   : > { %v916_v47 = vpop.f32.mrf.mxu0  ;;  %979 = vmatprep.mubr.msk.f32.mxu1 %vm1043_vm0, %v1042_v1 }
  0xe7   : > { %v480_v48 = vmax.f32 %v403_v46, 0.0 }
  0xe8   : > { %v407_v49 = vpop.f32.mrf.mxu0 }
  0xe9   : > { %v408_v50 = vadd.f32 %v1205_v28, %v407_v49  ;;  %980 = vmatmul.mubr.msk.f32.gmra.mxu1 %vm258_vm1, %v480_v48 }
  0xea   : > { %v919_v51 = vpop.f32.mrf.mxu0  ;;  %982 = vmatprep.mubr.msk.f32.mxu1 %vm1043_vm0, %v1042_v1 }
  0xeb   : > { %v481_v52 = vmax.f32 %v408_v50, 0.0 }
  0xec   : > { %v412_v53 = vpop.f32.mrf.mxu0 }
  0xed   : > { %v413_v54 = vadd.f32 %v1205_v28, %v412_v53  ;;  %983 = vmatmul.mubr.msk.f32.gmra.mxu1 %vm258_vm1, %v481_v52 }
  0xee   : > { %v922_v55 = vpop.f32.mrf.mxu0  ;;  %985 = vmatprep.mubr.msk.f32.mxu1 %vm1043_vm0, %v1042_v1 }
  0xef   : > { %v482_v56 = vmax.f32 %v413_v54, 0.0 }
  0xf0   : > { %v417_v57 = vpop.f32.mrf.mxu0 }
  0xf1   : > { %v418_v58 = vadd.f32 %v1205_v28, %v417_v57  ;;  %986 = vmatmul.mubr.msk.f32.gmra.mxu1 %vm258_vm1, %v482_v56 }
  0xf2   : > { %v925_v59 = vpop.f32.mrf.mxu0  ;;  %988 = vmatprep.mubr.msk.f32.mxu1 %vm1043_vm0, %v1042_v1 }
  0xf3   : > { %v483_v60 = vmax.f32 %v418_v58, 0.0 }
  0xf4   : > { %v422_v61 = vpop.f32.mrf.mxu0 }
  0xf5   : > { %v423_v62 = vadd.f32 %v1205_v28, %v422_v61  ;;  %989 = vmatmul.mubr.msk.f32.gmra.mxu1 %vm258_vm1, %v483_v60 }
  0xf6   : > { %v928_v63 = vpop.f32.mrf.mxu0  ;;  %991 = vmatprep.mubr.msk.f32.mxu1 %vm1043_vm0, %v1042_v1 }
  0xf7   : > { %v484_v0 = vmax.f32 %v423_v62, 0.0 }
  0xf8   : > { %v427_v2 = vpop.f32.mrf.mxu0 }
  0xf9   : > { %v428_v3 = vadd.f32 %v1205_v28, %v427_v2  ;;  %992 = vmatmul.mubr.msk.f32.gmra.mxu1 %vm258_vm1, %v484_v0 }
  0xfa   : > { %v931_v4 = vpop.f32.mrf.mxu0  ;;  %994 = vmatprep.mubr.msk.f32.mxu1 %vm1043_vm0, %v1042_v1 }
  0xfb   : > { %v485_v5 = vmax.f32 %v428_v3, 0.0 }
  0xfc   : > { %v432_v6 = vpop.f32.mrf.mxu0 }
  0xfd   : > { %v433_v7 = vadd.f32 %v1205_v28, %v432_v6  ;;  %995 = vmatmul.mubr.msk.f32.gmra.mxu1 %vm258_vm1, %v485_v5 }
  0xfe   : > { %v934_v8 = vpop.f32.mrf.mxu0  ;;  %997 = vmatprep.mubr.msk.f32.mxu1 %vm1043_vm0, %v1042_v1 }
  0xff   : > { %v486_v9 = vmax.f32 %v433_v7, 0.0 }
 0x100   : > { %v437_v10 = vpop.f32.mrf.mxu0 }
 0x101   : > { %v438_v11 = vadd.f32 %v1205_v28, %v437_v10  ;;  %998 = vmatmul.mubr.msk.f32.gmra.mxu1 %vm258_vm1, %v486_v9 }
 0x102   : > { %v937_v12 = vpop.f32.mrf.mxu0  ;;  %1000 = vmatprep.mubr.msk.f32.mxu1 %vm1043_vm0, %v1042_v1 }
 0x103   : > { %v487_v13 = vmax.f32 %v438_v11, 0.0 }
 0x104   : > { %v442_v14 = vpop.f32.mrf.mxu0 }
 0x105   : > { %v443_v15 = vadd.f32 %v1205_v28, %v442_v14  ;;  %1001 = vmatmul.mubr.msk.f32.gmra.mxu1 %vm258_vm1, %v487_v13 }
 0x106   : > { %v940_v16 = vpop.f32.mrf.mxu0  ;;  %1003 = vmatprep.mubr.msk.f32.mxu1 %vm1043_vm0, %v1042_v1 }
 0x107   : > { %v488_v17 = vmax.f32 %v443_v15, 0.0 }
 0x108   : > { %v447_v18 = vpop.f32.mrf.mxu0 }
 0x109   : > { %v448_v19 = vadd.f32 %v1205_v28, %v447_v18  ;;  %1004 = vmatmul.mubr.msk.f32.gmra.mxu1 %vm258_vm1, %v488_v17 }
 0x10a   : > { %v943_v20 = vpop.f32.mrf.mxu0  ;;  %1006 = vmatprep.mubr.msk.f32.mxu1 %vm1043_vm0, %v1042_v1 }
 0x10b   : > { %v489_v21 = vmax.f32 %v448_v19, 0.0 }
 0x10c   : > { %v452_v22 = vpop.f32.mrf.mxu0 }
 0x10d   : > { %v453_v23 = vadd.f32 %v1205_v28, %v452_v22  ;;  %1007 = vmatmul.mubr.msk.f32.gmra.mxu1 %vm258_vm1, %v489_v21 }
 0x10e   : > { %v946_v24 = vpop.f32.mrf.mxu0  ;;  %1009 = vmatprep.mubr.msk.f32.mxu1 %vm1043_vm0, %v1042_v1 }
 0x10f   : > { %v490_v25 = vmax.f32 %v453_v23, 0.0 }
 0x110   : > { %v457_v26 = vpop.f32.mrf.mxu0 }
 0x111   : > { %v458_v27 = vadd.f32 %v1205_v28, %v457_v26  ;;  %1010 = vmatmul.mubr.msk.f32.gmra.mxu1 %vm258_vm1, %v490_v25 }
 0x112   : > { %v949_v29 = vpop.f32.mrf.mxu0  ;;  %1012 = vmatprep.mubr.msk.f32.mxu1 %vm1043_vm0, %v1042_v1 }
 0x113   : > { %v491_v30 = vmax.f32 %v458_v27, 0.0 }
 0x114   : > { %v462_v31 = vpop.f32.mrf.mxu0 }
 0x115   : > { %v463_v32 = vadd.f32 %v1205_v28, %v462_v31  ;;  %1013 = vmatmul.mubr.msk.f32.gmra.mxu1 %vm258_vm1, %v491_v30 }
 0x116   : > { %v952_v33 = vpop.f32.mrf.mxu0  ;;  %1015 = vmatprep.mubr.msk.f32.mxu1 %vm1043_vm0, %v1042_v1 }
 0x117   : > { %v492_v34 = vmax.f32 %v463_v32, 0.0 }
 0x118   : > { %v467_v35 = vpop.f32.mrf.mxu0 }
 0x119   : > { %v468_v36 = vadd.f32 %v1205_v28, %v467_v35  ;;  %1016 = vmatmul.mubr.msk.f32.gmra.mxu1 %vm258_vm1, %v492_v34 }
 0x11a   : > { %v955_v37 = vpop.f32.mrf.mxu0  ;;  %1018 = vmatprep.mubr.msk.f32.mxu1 %vm1043_vm0, %v1042_v1 }
 0x11b   : > { %v493_v38 = vmax.f32 %v468_v36, 0.0 }
 0x11c   : > { %v472_v39 = vpop.f32.mrf.mxu0 }
 0x11d   : > { %v473_v40 = vadd.f32 %v1205_v28, %v472_v39  ;;  %1019 = vmatmul.mubr.msk.f32.gmra.mxu1 %vm258_vm1, %v493_v38 }
 0x11e   : > { %v958_v41 = vpop.f32.mrf.mxu0  ;;  %1021 = vmatprep.mubr.msk.f32.mxu1 %vm1043_vm0, %v1042_v1 }
 0x11f   : > { %v494_v42 = vmax.f32 %v473_v40, 0.0 }
 0x121   : > { %1022 = vmatmul.mubr.msk.f32.gmra.mxu1 %vm258_vm1, %v494_v42 }
 0x199   : > { %v629_v28 = vpop.f32.mrf.mxu1 }
 0x19a   : > { %v630_v1 = vadd.f32 %v1284_v43, %v629_v28 }
 0x19b   : > { %v969_v44 = vpop.f32.mrf.mxu1 }
 0x19c   : > { %724 = vst.msk [vmem:[%s1291_s24] sm:$0xff] %vm723_vm2, %v630_v1 }
 0x19d   : > { %v634_v45 = vpop.f32.mrf.mxu1 }
 0x19e   : > { %v635_v46 = vadd.f32 %v1284_v43, %v634_v45 }
 0x19f   : > { %v972_v47 = vpop.f32.mrf.mxu1 }
 0x1a0   : > { %725 = vst.msk [vmem:[%s1291_s24 + $0x8] sm:$0xff] %vm723_vm2, %v635_v46 }
 0x1a1   : > { %v639_v48 = vpop.f32.mrf.mxu1 }
 0x1a2   : > { %v640_v49 = vadd.f32 %v1284_v43, %v639_v48 }
 0x1a3   : > { %v975_v50 = vpop.f32.mrf.mxu1 }
 0x1a4   : > { %726 = vst.msk [vmem:[%s1291_s24 + $0x10] sm:$0xff] %vm723_vm2, %v640_v49 }
 0x1a5   : > { %v644_v51 = vpop.f32.mrf.mxu1 }
 0x1a6   : > { %v645_v52 = vadd.f32 %v1284_v43, %v644_v51 }
 0x1a7   : > { %v978_v53 = vpop.f32.mrf.mxu1 }
 0x1a8   : > { %727 = vst.msk [vmem:[%s1291_s24 + $0x18] sm:$0xff] %vm723_vm2, %v645_v52 }
 0x1a9   : > { %v649_v54 = vpop.f32.mrf.mxu1 }
 0x1aa   : > { %v650_v55 = vadd.f32 %v1284_v43, %v649_v54 }
 0x1ab   : > { %v981_v56 = vpop.f32.mrf.mxu1 }
 0x1ac   : > { %728 = vst.msk [vmem:[%s1291_s24 + $0x20] sm:$0xff] %vm723_vm2, %v650_v55 }
 0x1ad   : > { %v654_v57 = vpop.f32.mrf.mxu1 }
 0x1ae   : > { %v655_v58 = vadd.f32 %v1284_v43, %v654_v57 }
 0x1af   : > { %v984_v59 = vpop.f32.mrf.mxu1 }
 0x1b0   : > { %729 = vst.msk [vmem:[%s1291_s24 + $0x28] sm:$0xff] %vm723_vm2, %v655_v58 }
 0x1b1   : > { %v659_v60 = vpop.f32.mrf.mxu1 }
 0x1b2   : > { %v660_v61 = vadd.f32 %v1284_v43, %v659_v60 }
 0x1b3   : > { %v987_v62 = vpop.f32.mrf.mxu1 }
 0x1b4   : > { %730 = vst.msk [vmem:[%s1291_s24 + $0x30] sm:$0xff] %vm723_vm2, %v660_v61 }
 0x1b5   : > { %v664_v63 = vpop.f32.mrf.mxu1 }
 0x1b6   : > { %v665_v0 = vadd.f32 %v1284_v43, %v664_v63 }
 0x1b7   : > { %v990_v2 = vpop.f32.mrf.mxu1 }
 0x1b8   : > { %731 = vst.msk [vmem:[%s1291_s24 + $0x38] sm:$0xff] %vm723_vm2, %v665_v0 }
 0x1b9   : > { %v669_v3 = vpop.f32.mrf.mxu1 }
 0x1ba   : > { %v670_v4 = vadd.f32 %v1284_v43, %v669_v3 }
 0x1bb   : > { %v993_v5 = vpop.f32.mrf.mxu1 }
 0x1bc   : > { %732 = vst.msk [vmem:[%s1291_s24 + $0x40] sm:$0xff] %vm723_vm2, %v670_v4 }
 0x1bd   : > { %v674_v6 = vpop.f32.mrf.mxu1 }
 0x1be   : > { %v675_v7 = vadd.f32 %v1284_v43, %v674_v6 }
 0x1bf   : > { %v996_v8 = vpop.f32.mrf.mxu1 }
 0x1c0   : > { %733 = vst.msk [vmem:[%s1291_s24 + $0x48] sm:$0xff] %vm723_vm2, %v675_v7 }
 0x1c1   : > { %v679_v9 = vpop.f32.mrf.mxu1 }
 0x1c2   : > { %v680_v10 = vadd.f32 %v1284_v43, %v679_v9 }
 0x1c3   : > { %v999_v11 = vpop.f32.mrf.mxu1 }
 0x1c4   : > { %734 = vst.msk [vmem:[%s1291_s24 + $0x50] sm:$0xff] %vm723_vm2, %v680_v10 }
 0x1c5   : > { %v684_v12 = vpop.f32.mrf.mxu1 }
 0x1c6   : > { %v685_v13 = vadd.f32 %v1284_v43, %v684_v12 }
 0x1c7   : > { %v1002_v14 = vpop.f32.mrf.mxu1 }
 0x1c8   : > { %735 = vst.msk [vmem:[%s1291_s24 + $0x58] sm:$0xff] %vm723_vm2, %v685_v13 }
 0x1c9   : > { %v689_v15 = vpop.f32.mrf.mxu1 }
 0x1ca   : > { %v690_v16 = vadd.f32 %v1284_v43, %v689_v15 }
 0x1cb   : > { %v1005_v17 = vpop.f32.mrf.mxu1 }
 0x1cc   : > { %736 = vst.msk [vmem:[%s1291_s24 + $0x60] sm:$0xff] %vm723_vm2, %v690_v16 }
 0x1cd   : > { %v694_v18 = vpop.f32.mrf.mxu1 }
 0x1ce   : > { %v695_v19 = vadd.f32 %v1284_v43, %v694_v18 }
 0x1cf   : > { %v1008_v20 = vpop.f32.mrf.mxu1 }
 0x1d0   : > { %737 = vst.msk [vmem:[%s1291_s24 + $0x68] sm:$0xff] %vm723_vm2, %v695_v19 }
 0x1d1   : > { %v699_v21 = vpop.f32.mrf.mxu1 }
 0x1d2   : > { %v700_v22 = vadd.f32 %v1284_v43, %v699_v21 }
 0x1d3   : > { %v1011_v23 = vpop.f32.mrf.mxu1 }
 0x1d4   : > { %738 = vst.msk [vmem:[%s1291_s24 + $0x70] sm:$0xff] %vm723_vm2, %v700_v22 }
 0x1d5   : > { %v704_v24 = vpop.f32.mrf.mxu1 }
 0x1d6   : > { %v705_v25 = vadd.f32 %v1284_v43, %v704_v24 }
 0x1d7   : > { %v1014_v26 = vpop.f32.mrf.mxu1 }
 0x1d8   : > { %739 = vst.msk [vmem:[%s1291_s24 + $0x78] sm:$0xff] %vm723_vm2, %v705_v25 }
 0x1d9   : > { %v709_v27 = vpop.f32.mrf.mxu1 }
 0x1da   : > { %v710_v29 = vadd.f32 %v1284_v43, %v709_v27 }
 0x1db   : > { %v1017_v30 = vpop.f32.mrf.mxu1 }
 0x1dc   : > { %740 = vst.msk [vmem:[%s1291_s24 + $0x80] sm:$0xff] %vm723_vm2, %v710_v29 }
 0x1dd   : > { %v714_v31 = vpop.f32.mrf.mxu1 }
 0x1de   : > { %v715_v32 = vadd.f32 %v1284_v43, %v714_v31 }
 0x1df   : > { %v1020_v33 = vpop.f32.mrf.mxu1 }
 0x1e0   : > { %741 = vst.msk [vmem:[%s1291_s24 + $0x88] sm:$0xff] %vm723_vm2, %v715_v32 }
 0x1e1   : > { %v719_v34 = vpop.f32.mrf.mxu1 }
 0x1e2   : > { %v720_v35 = vadd.f32 %v1284_v43, %v719_v34 }
 0x1e3   : > { %v1023_v36 = vpop.f32.mrf.mxu1 }
 0x1e4   : > { %742 = vst.msk [vmem:[%s1291_s24 + $0x90] sm:$0xff] %vm723_vm2, %v720_v35 }
 0x1e5 PF: > { %s15_s18 = sadd.s32 1, %s1040_s18  }
 0x1e6   : > { %p12_p4 = scmp.ge.s32.totalorder %s15_s18, 4  }
 0x1e8   :  { %14 = sbr.rel (!%p12_p4) target bundleno = 1 (0x1), region = 70 }

</bundles_post_ra>
